<compile_context>
chip_gen: v5e
topology: v5e:2x2
jax: 0.10.0
libtpu: 0.0.40
codegen_flags: <defaults>
</compile_context>

<pallas_src>
import math
import functools

import jax
import jax.numpy as jnp
from jax.experimental import pallas as pl
from jax.experimental.pallas import tpu as pltpu


def build_pe_table(d_model: int, max_len: int) -> jnp.ndarray:
    """Positional-encoding buffer matching the PyTorch __init__ exactly
    (including the missing minus sign in div_term)."""
    position = jnp.arange(0, max_len, dtype=jnp.float32)[:, None]            # [max_len, 1]
    div_term = jnp.exp(
        jnp.arange(0, d_model, 2, dtype=jnp.float32) * (math.log(10000.0) / d_model)
    )                                                                         # [d_model/2]
    pe = jnp.zeros((max_len, d_model), dtype=jnp.float32)
    pe = pe.at[:, 0::2].set(jnp.sin(position * div_term))
    pe = pe.at[:, 1::2].set(jnp.cos(position * div_term))
    return pe                                                                 # [max_len, d_model]


# ---------------------------------------------------------------------------
# Kernels: refs are 2-D (rows, lanes) tiles; batch dim is squeezed by BlockSpec.
# ---------------------------------------------------------------------------
def _pe_add_kernel(x_ref, pe_ref, o_ref):
    o_ref[...] = (x_ref[...] + pe_ref[...]).astype(o_ref.dtype)


def _pe_add_dropout_kernel(x_ref, pe_ref, bits_ref, o_ref, *, keep_thresh, inv_keep):
    y = x_ref[...] + pe_ref[...]
    keep = bits_ref[...] >= jnp.uint32(keep_thresh)        # P(keep) = 1 - p
    o_ref[...] = jnp.where(keep, y * jnp.float32(inv_keep),
                           jnp.float32(0.0)).astype(o_ref.dtype)


def _pick_rows(R: int, C: int, tile_bytes: int) -> int:
    """Largest row-tile (multiple of 8, preferably dividing R) fitting tile_bytes."""
    max_rows = max(8, (tile_bytes // (C * 4)) // 8 * 8)
    if R <= max_rows:
        return R
    for t in range(max_rows, 7, -8):
        if R % t == 0:
            return t
    return max_rows  # ragged final block; Pallas pads/masks it


def positional_encoding_forward(x, pe_table, *, p=0.1, training=True, key=None,
                                tile_bytes=4 * 1024 * 1024, vmem_limit_bytes=None):
    """x: [B, S, D]; pe_table: [max_len, D].  Returns dropout(x + pe[:S], p)."""
    B, S, D = x.shape
    assert pe_table.shape[0] >= S and pe_table.shape[1] == D
    pe_slice = pe_table[:S, :]                                # glue: static slice

    # Lane-dense view of the per-batch (S, D) slab.
    F = S * D
    if F % 128 == 0:
        R, C = F // 128, 128
    else:
        R, C = S, D                                           # fallback layout
    x_v = x.reshape(B, R, C)
    pe_v = pe_slice.reshape(R, C)

    TR = _pick_rows(R, C, tile_bytes)
    grid = (pl.cdiv(R, TR), B)                                # batch innermost -> pe resident

    x_spec = pl.BlockSpec((None, TR, C), lambda r, b: (b, r, 0))
    pe_spec = pl.BlockSpec((TR, C), lambda r, b: (r, 0))
    out_spec = pl.BlockSpec((None, TR, C), lambda r, b: (b, r, 0))

    cp_kwargs = dict(dimension_semantics=("parallel", "parallel"))
    if vmem_limit_bytes is not None:
        cp_kwargs["vmem_limit_bytes"] = vmem_limit_bytes
    compiler_params = pltpu.CompilerParams(**cp_kwargs)

    if training and p > 0.0:
        if key is None:
            key = jax.random.PRNGKey(0)
        bits = jax.random.bits(key, (B, R, C), dtype=jnp.uint32)
        keep_thresh = min(int(round(p * 2.0 ** 32)), 2 ** 32 - 1)
        kernel = functools.partial(_pe_add_dropout_kernel,
                                   keep_thresh=keep_thresh,
                                   inv_keep=1.0 / (1.0 - p))
        out_v = pl.pallas_call(
            kernel,
            out_shape=jax.ShapeDtypeStruct((B, R, C), x.dtype),
            grid=grid,
            in_specs=[x_spec, pe_spec, x_spec],               # bits uses the x layout
            out_specs=out_spec,
            compiler_params=compiler_params,
        )(x_v, pe_v, bits)
    else:
        out_v = pl.pallas_call(
            _pe_add_kernel,
            out_shape=jax.ShapeDtypeStruct((B, R, C), x.dtype),
            grid=grid,
            in_specs=[x_spec, pe_spec],
            out_specs=out_spec,
            compiler_params=compiler_params,
        )(x_v, pe_v)

    return out_v.reshape(B, S, D)


if __name__ == "__main__":
    B, S, D = 2, 8, 32
    max_len = 64
    p = 0.1

    root = jax.random.PRNGKey(0)
    kx, kd = jax.random.split(root)
    x = jax.random.normal(kx, (B, S, D), dtype=jnp.float32)
    pe_table = build_pe_table(d_model=D, max_len=max_len)

    # Training-mode forward (with dropout), as in the PyTorch module's default state.
    out = positional_encoding_forward(x, pe_table, p=p, training=True, key=kd)
    out = jax.block_until_ready(out)

    # Eval-mode sanity check (dropout = identity): must equal x + pe exactly.
    out_eval = positional_encoding_forward(x, pe_table, p=p, training=False)
    out_eval = jax.block_until_ready(out_eval)
    ref_eval = x + pe_table[None, :S, :]
    assert jnp.allclose(out_eval, ref_eval, atol=1e-6), "eval-mode mismatch"

    # Training-mode elements are either 0 or (x+pe)/(1-p).
    scaled = ref_eval / (1.0 - p)
    ok = jnp.logical_or(jnp.isclose(out, 0.0, atol=1e-6),
                        jnp.isclose(out, scaled, atol=1e-5, rtol=1e-5))
    assert bool(jnp.all(ok)), "training-mode dropout mismatch"

    print("KERNEL_OK")
</pallas_src>

<mosaic_0001>
module attributes {stable_mosaic.version = 11 : i64} {
  func.func @_pe_add_dropout_kernel(%arg0: i32, %arg1: i32, %arg2: memref<1x2x128xf32, #tpu.memory_space<vmem>>, %arg3: memref<2x128xf32, #tpu.memory_space<vmem>>, %arg4: memref<1x2x128xi32, #tpu.memory_space<vmem>>, %arg5: memref<1x2x128xf32, #tpu.memory_space<vmem>>) attributes {dimension_semantics = [#tpu.dimension_semantics<parallel>, #tpu.dimension_semantics<parallel>], iteration_bounds = array<i64: 1, 2>, scalar_prefetch = 0 : i64, scratch_operands = 0 : i64, tpu.core_type = #tpu.core_type<tc>, window_params = [{transform_indices = @transform_0, window_bounds = array<i64: 1, 2, 128>}, {transform_indices = @transform_1, window_bounds = array<i64: 2, 128>}, {transform_indices = @transform_2, window_bounds = array<i64: 1, 2, 128>}, {transform_indices = @transform_3, window_bounds = array<i64: 1, 2, 128>}]} {
    %c0 = arith.constant 0 : index
    %c0_0 = arith.constant 0 : index
    %c0_1 = arith.constant 0 : index
    %0 = vector.load %arg2[%c0, %c0_0, %c0_1] : memref<1x2x128xf32, #tpu.memory_space<vmem>>, vector<1x2x128xf32>
    %1 = vector.shape_cast %0 : vector<1x2x128xf32> to vector<2x128xf32>
    %c0_2 = arith.constant 0 : index
    %c0_3 = arith.constant 0 : index
    %2 = vector.load %arg3[%c0_2, %c0_3] : memref<2x128xf32, #tpu.memory_space<vmem>>, vector<2x128xf32>
    %3 = arith.addf %1, %2 : vector<2x128xf32>
    %c0_4 = arith.constant 0 : index
    %c0_5 = arith.constant 0 : index
    %c0_6 = arith.constant 0 : index
    %4 = vector.load %arg4[%c0_4, %c0_5, %c0_6] : memref<1x2x128xi32, #tpu.memory_space<vmem>>, vector<1x2x128xi32>
    %5 = vector.shape_cast %4 : vector<1x2x128xi32> to vector<2x128xi32>
    %c429496730_i32 = arith.constant 429496730 : i32
    %6 = vector.broadcast %c429496730_i32 : i32 to vector<2x128xi32>
    %7 = arith.cmpi uge, %5, %6 : vector<2x128xi32>
    %cst = arith.constant 1.11111116 : f32
    %8 = vector.broadcast %cst : f32 to vector<2x128xf32>
    %9 = arith.mulf %3, %8 : vector<2x128xf32>
    %cst_7 = arith.constant 0.000000e+00 : f32
    %10 = vector.broadcast %cst_7 : f32 to vector<2x128xf32>
    %11 = arith.select %7, %9, %10 : vector<2x128xi1>, vector<2x128xf32>
    %c0_8 = arith.constant 0 : index
    %c0_9 = arith.constant 0 : index
    %c0_10 = arith.constant 0 : index
    %12 = vector.load %arg5[%c0_8, %c0_9, %c0_10] : memref<1x2x128xf32, #tpu.memory_space<vmem>>, vector<1x2x128xf32>
    %13 = vector.shape_cast %12 : vector<1x2x128xf32> to vector<2x128xf32>
    %14 = vector.shape_cast %11 : vector<2x128xf32> to vector<1x2x128xf32>
    tpu.vector_store %arg5[%c0_8, %c0_9, %c0_10], %14 {strides = array<i32>} : memref<1x2x128xf32, #tpu.memory_space<vmem>>, vector<1x2x128xf32>,
    return
  }
  func.func @transform_0(%arg0: i32, %arg1: i32) -> (i32, i32, i32) {
    %c0_i32 = arith.constant 0 : i32
    %c0_i32_0 = arith.constant 0 : i32
    return %arg1, %arg0, %c0_i32 : i32, i32, i32
  }
  func.func @transform_1(%arg0: i32, %arg1: i32) -> (i32, i32) {
    %c0_i32 = arith.constant 0 : i32
    %c0_i32_0 = arith.constant 0 : i32
    return %arg0, %c0_i32 : i32, i32
  }
  func.func @transform_2(%arg0: i32, %arg1: i32) -> (i32, i32, i32) {
    %c0_i32 = arith.constant 0 : i32
    %c0_i32_0 = arith.constant 0 : i32
    return %arg1, %arg0, %c0_i32 : i32, i32, i32
  }
  func.func @transform_3(%arg0: i32, %arg1: i32) -> (i32, i32, i32) {
    %c0_i32 = arith.constant 0 : i32
    %c0_i32_0 = arith.constant 0 : i32
    return %arg1, %arg0, %c0_i32 : i32, i32, i32
  }
}

</mosaic_0001>

<bundles_post_ra>
// kernel: tpu_custom_call.1
= control target key start
LH: loop header
LB: loop body
LE: loop exit
PB: predicated region body
PF: predicated region fallthrough
CT: control target
= control target key end

     0   :  { %8 = vsyncpa [#allocation3], 0  ;;  %s873_s0 = inlined_call_operand.hbm [shape: f32[2,2,128], index: 0, kind: input, shape index: {}]   ;;  %s874_s1 = inlined_call_operand.hbm [shape: f32[2,128], index: 1, kind: input, shape index: {}]   ;;  %s875_s2 = inlined_call_operand.hbm [shape: u32[2,2,128], index: 2, kind: input, shape index: {}]   ;;  %s876_s3 = inlined_call_operand.hbm [shape: f32[2,2,128], index: 3, kind: output, shape index: {}]  }
   0x1   :  { %10 = vsyncpa [#allocation3 + $0x1], 0 }
   0x2   :  { %11 = vsyncpa [#allocation6], 0 }
   0x3   :  { %12 = vsyncpa [#allocation4], 0 }
   0x4   :  { %14 = vsyncpa [#allocation4 + $0x1], 0  ;;  %s706_s12 = smov 0   ;;  %s708_s13 = smov 0  }
   0x5   :  { %s710_s14 = smov 0   ;;  %s712_s15 = smov 0  }
   0x6   :  { %s714_s16 = smov 0   ;;  %s716_s17 = smov 0  }
   0x7 LB: > { %s29_s18 = sadd.s32 1, %s679_s16  ;;  %s41_s19 = sadd.s32 1, %s671_s14  ;;  %s683_s17 = sphi %s716_s17, %s20_s17   ;;  %s679_s16 = sphi %s714_s16, %s887_s16   ;;  %s675_s15 = sphi %s712_s15, %s886_s15   ;;  %s671_s14 = sphi %s710_s14, %s885_s14   ;;  %s667_s13 = sphi %s708_s13, %s884_s13   ;;  %s663_s12 = sphi %s706_s12, %s883_s12  }
   0x8   : > { %p30_p0 = scmp.ge.s32.totalorder %s29_s18, 2  ;;  %p48_p1 = scmp.ne.s32.totalorder %s671_s14, %s667_s13 }
   0x9   : > { %p49_p2 = scmp.eq.s32.totalorder %s683_s17, 0  ;;  %p410_p3 = scmp.ge.s32.totalorder %s683_s17, 2 }
   0xa   : > { %s889_s18 = smov (%p30_p0, %s29_s18), 0  ;;  %p451_p5 = scmp.lt.s32.totalorder %s683_s17, 2 }
   0xb   : > { %p747_p4 = por %p49_p2, %p48_p1  ;;  %s36_s21 = ssub.s32 %s679_s16, %s889_s18 }
   0xc   : > { %s174_s22 = sand.u32 1, %s683_s17   ;;  %p39_p6 = scmp.eq.s32.totalorder %s36_s21, 0 }
   0xd   : > { %s176_s23 = sand.u32 1, %s671_s14   ;;  %s412_s24 = sshll.u32 %s679_s16, 1 }
   0xe   : > { %s758_s25 = scalar_select %p39_p6, %s671_s14, %s41_s19  }
   0xf   : > { %s760_s26 = sshll.u32 %s176_s23, 1  ;;  %s183_s29 = scalar_lea.hbm %s873_s0, %s412_s24 }
  0x10   : > { %s185_s30 = sshll.u32 %s183_s29, 4  ;;  %s178_s4 = scalar_lea.vmem [#allocation2], %s760_s26  ;;  %s186_s30 = int_to_ptr.hbm [resolvable:$true] %s185_s30 }
  0x11   : > { %s187_s5 = sshll.u32 %s178_s4, 4  ;;  %p770_p7 = pnand %p451_p5, %p747_p4  ;;  %s188_s5 = int_to_ptr.vmem [resolvable:$true] %s187_s5 }
  0x12   : > { %s203_s9 = scalar_lea.hbm %s875_s2, %s412_s24  ;;  %s175_s10 = scalar_lea.sflag [#allocation3], %s174_s22 }
  0x13   : > { %442 = dma.hbm_to_vmem [thread:$0]  (!%p770_p7), %s186_s30, 32, %s188_s5, %s175_s10  }
  0x14   : > { %s780_s11 = sadd.s32 4294967295, %s683_s17   ;;  %s407_s19 = sadd.s32 4294967294, %s683_s17  }
  0x15   : > { %p54_p8 = scmp.ne.s32.totalorder %s667_s13, %s663_s12  ;;  %p55_p9 = scmp.eq.s32.totalorder %s780_s11, 0 }
  0x16   : > { %p134_p10 = scmp.eq.s32.totalorder %s780_s11, 1  ;;  %p140_p11 = scmp.eq.s32.totalorder %s407_s19, 1 }
  0x17   : > { %p408_p12 = scmp.ge.s32.totalorder %s683_s17, 1  ;;  %p790_p13 = por %p55_p9, %p54_p8 }
  0x18   : > { %p797_p0 = por %p134_p10, %p48_p1  ;;  %p801_p2 = por %p140_p11, %p54_p8 }
  0x19   : > { %p147_p4 = scmp.lt.s32.totalorder %s683_s17, 3  ;;  %s161_s28 = sshll.u32 %s874_s1, 4  ;;  %s162_s28 = int_to_ptr.hbm [resolvable:$true] %s161_s28 }
  0x1a   : > { %s205_s29 = sshll.u32 %s203_s9, 4  ;;  %s685_s30 = smov [#allocation5]   ;;  %s206_s29 = int_to_ptr.hbm [resolvable:$true] %s205_s29 }
  0x1b   : > { %p806_p5 = pnand %p408_p12, %p147_p4  ;;  %s163_s4 = sshll.u32 %s685_s30, 4  ;;  %s164_s4 = int_to_ptr.vmem [resolvable:$true] %s163_s4 }
  0x1c   : > { %s198_s5 = scalar_lea.vmem [#allocation7], %s760_s26  ;;  %s218_s8 = sand.u32 (!%p806_p5), 1, %s780_s11  }
  0x1d   : > { %p435_p1 = pneg %p806_p5  ;;  %s207_s7 = sshll.u32 %s198_s5, 4  ;;  %s208_s7 = int_to_ptr.vmem [resolvable:$true] %s207_s7 }
  0x1e   : > { %445 = dma.hbm_to_vmem [thread:$0]  (!%p770_p7), %s206_s29, 32, %s208_s7, %s175_s10  }
  0x1f   : > { %p436_p6 = pnand %p435_p1, %p55_p9  ;;  %216 = sbr.rel (%p806_p5) target bundleno = 56 (0x38), region = 32 }
  0x20   : > { %s220_s9 = sand.u32 (!%p806_p5), 1, %s667_s13   ;;  %s219_s24 = scalar_lea.sflag (!%p806_p5), [#allocation3], %s218_s8 }
  0x21   : > { %438 = dma.hbm_to_vmem [thread:$0]  (!%p436_p6), %s162_s28, 32, %s164_s4, [#allocation6]  }
  0x22   : > { %s416_s19 = sshll.u32 (!%p806_p5), %s220_s9, 1 }
  0x23   : > { %s222_s27 = scalar_lea.vmem (!%p806_p5), [#allocation2], %s416_s19 }
  0x24   : > { %646 = dma.done.wait (%p790_p13), %s219_s24, 32  }
  0x25   : > { %648 = vsyncadd (%p790_p13), %s219_s24, 4294967264 }
  0x26   : > { %650 = dma.done.wait (%p55_p9), [#allocation6], 32  }
  0x27   : > { %652 = vsyncadd (%p55_p9), [#allocation6], 4294967264  ;;  %s237_s26 = scalar_lea.vmem [#allocation7], %s416_s19 }
  0x28   : > { %654 = dma.done.wait (%p790_p13), %s219_s24, 32  }
  0x29   : > { %656 = vsyncadd (%p790_p13), %s219_s24, 4294967264  ;;  %s422_s6 = sshll.u32 %s675_s15, 1  ;;  %v266_v0 = vld [vmem:[%s222_s27] sm:$0x3]  ;;  %v267_v1 = vld [vmem:[#allocation5] sm:$0x3] }
  0x2a   : > { %s288_s28 = scalar_lea.hbm %s876_s3, %s422_s6  ;;  %v269_v2 = vld [vmem:[%s237_s26] sm:$0x3]  ;;  %v268_v3 = vadd.f32 %v267_v1, %v266_v0  ;;  %s265_s11 = scalar_lea.vmem [#allocation8], %s416_s19 }
  0x2b   : > { %v420_v4 = vxor.u32 2147483648, %v269_v2  ;;  %s290_s29 = sshll.u32 %s265_s11, 4  ;;  %s292_s30 = sshll.u32 %s288_s28, 4  ;;  %s291_s29 = int_to_ptr.vmem [resolvable:$true] %s290_s29  ;;  %s293_s30 = int_to_ptr.hbm [resolvable:$true] %s292_s30 }
  0x2c   : > { %v273_v5 = vmul.f32 1.1111112, %v268_v3  ;;  %s277_s15 = scalar_lea.sflag [#allocation4], %s220_s9  ;;  %s607_s20 = sshra.s32 %s293_s30, 4  ;;  %s608_s20 = int_to_ptr.hbm [resolvable:$true] %s607_s20 }
  0x2d   : > { %vm272_vm0 = vcmp.ge.s32.totalorder %v420_v4, 2576980378  ;;  %s609_s4 = scalar_lea.hbm %s608_s20, 2  ;;  %s613_s8 = scalar_lea.hbm %s876_s3, 4 }
  0x2e   : > { %v274_v6 = vsel %vm272_vm0, %v273_v5, 0.0  ;;  %p610_p7 = scmp.ne.s32.totalorder %s608_s20, %s609_s4  ;;  %p614_p10 = scmp.lt.s32.totalorder %s608_s20, %s876_s3 }
  0x2f   : > { %275 = vst [vmem:[%s265_s11] sm:$0x3] %v274_v6  ;;  %p615_p11 = scmp.lt.s32.totalorder %s613_s8, %s609_s4 }
  0x30   : > { %p611_p8 = pnand %p610_p7, %p797_p0 }
  0x31   : > { %p616_p12 = por %p615_p11, %p614_p10 }
  0x32   : > { %p612_p9 = pneg %p611_p8 }
  0x34   : > { %p617_p13 = pnand %p616_p12, %p612_p9 }
  0x36   : > { %620 = shalt.err (!%p617_p13)
}
  0x37   : > { %433 = dma.vmem_to_hbm [thread:$0]  (%p797_p0), %s291_s29, 32, %s293_s30, %s277_s15  }
  0x38 PF: > { %s304_s9 = sand.u32 1, %s663_s12   ;;  %p447_p4 = pnand %p410_p3, %p801_p2 }
  0x39   : > { %s305_s27 = scalar_lea.sflag [#allocation4], %s304_s9 }
  0x3a   : > { %p448_p5 = pneg %p447_p4 }
  0x3c   : > { %658 = dma.done.wait (%p448_p5), %s305_s27, 32  }
  0x3d   : > { %660 = vsyncadd (%p448_p5), %s305_s27, 4294967264  ;;  %s20_s17 = sadd.s32 1, %s683_s17   ;;  %s883_s12 = smov %s667_s13 }
  0x3e   : > { %p17_p1 = scmp.ge.s32.totalorder %s20_s17, 4   ;;  %s884_s13 = smov %s671_s14 }
  0x3f   : > { %s885_s14 = smov %s758_s25  ;;  %s886_s15 = smov %s679_s16 }
  0x40   : > { %s887_s16 = smov %s889_s18  ;;  %19 = sbr.rel (!%p17_p1) target bundleno = 7 (0x7), region = 93 }
  0x45   :  { %311 = vsyncpa [#allocation3], 1 }
  0x46   :  { %313 = vsyncpa [#allocation3 + $0x1], 1 }
  0x47   :  { %314 = vsyncpa [#allocation6], 1 }
  0x48   :  { %315 = vsyncpa [#allocation4], 1 }
  0x49   :  { %317 = vsyncpa [#allocation4 + $0x1], 1 }

</bundles_post_ra>
